<compile_context>
chip_gen: v5e
topology: v5e:2x2
jax: 0.10.0
libtpu: 0.0.40
codegen_flags: <defaults>
</compile_context>

<pallas_src>
import jax
import jax.numpy as jnp
from jax import lax
from jax.experimental import pallas as pl
from jax.experimental.pallas import tpu as pltpu

HID = 128
BN_EPS = 1e-5
BF16 = jnp.bfloat16


def _roundup(x, m):
    return (x + m - 1) // m * m


def _vmem_capacity_bytes():
    """Per-core VMEM capacity (generation-aware) with a conservative fallback."""
    try:
        cap = getattr(pltpu.get_tpu_info(), "vmem_capacity_bytes", None)
        if cap:
            return int(cap)
    except Exception:
        pass
    return 64 << 20  # v7x per-TensorCore VMEM; v5e/v6e have 128 MiB.


# ---------------------------------------------------------------------------
# Single-block path (small / medium N): whole MLP fused into one kernel.
# ---------------------------------------------------------------------------
def _bn_relu(h, gamma, beta):
    """Training-mode BatchNorm1d + ReLU.  One pass over h, all f32."""
    mean = jnp.mean(h, axis=0, keepdims=True)
    # Clamp: E[h^2] - E[h]^2 can go slightly negative from cancellation.
    var = jnp.maximum(jnp.mean(h * h, axis=0, keepdims=True) - mean * mean, 0.0)
    scale = lax.rsqrt(var + BN_EPS) * gamma
    shift = beta - mean * scale
    return jnp.maximum(h * scale + shift, 0.0)


def _netT_single_kernel(z_ref, w1_ref, bn_ref, w2_ref, w3_ref, out_ref):
    # Operands arrive in bf16 (cast once in the wrapper); MXU accumulates f32.
    h = jnp.dot(z_ref[...], w1_ref[...], preferred_element_type=jnp.float32)
    h = _bn_relu(h, bn_ref[0:1, :], bn_ref[1:2, :])
    h = jnp.dot(h.astype(BF16), w2_ref[...], preferred_element_type=jnp.float32)
    h = _bn_relu(h, bn_ref[2:3, :], bn_ref[3:4, :])
    out_ref[...] = jnp.dot(h.astype(BF16), w3_ref[...],
                           preferred_element_type=jnp.float32)


# ---------------------------------------------------------------------------
# Row-tiled three-phase path (large N).  BN stats stay exact full-batch via
# per-tile partial (sum, sumsq) outputs combined in XLA between phases.
# ---------------------------------------------------------------------------
def _phase1_kernel(z_ref, w1_ref, h1_ref, st_ref):
    h = jnp.dot(z_ref[...], w1_ref[...], preferred_element_type=jnp.float32)
    h1_ref[...] = h.astype(BF16)
    st_ref[0:1, :] = jnp.sum(h, axis=0, keepdims=True)
    st_ref[1:2, :] = jnp.sum(h * h, axis=0, keepdims=True)
    st_ref[2:8, :] = jnp.zeros((6, HID), jnp.float32)


def _make_phase2_kernel(tm, n_true, need_mask):
    def kernel(h1_ref, ss_ref, w2_ref, h2_ref, st_ref):
        a = h1_ref[...].astype(jnp.float32)
        a = jnp.maximum(a * ss_ref[0:1, :] + ss_ref[1:2, :], 0.0)
        if need_mask:
            # Zero padded rows so they do not pollute bn2 statistics.
            row = (lax.broadcasted_iota(jnp.int32, a.shape, 0)
                   + pl.program_id(0) * tm)
            a = jnp.where(row < n_true, a, 0.0)
        h = jnp.dot(a.astype(BF16), w2_ref[...],
                    preferred_element_type=jnp.float32)
        h2_ref[...] = h.astype(BF16)
        st_ref[0:1, :] = jnp.sum(h, axis=0, keepdims=True)
        st_ref[1:2, :] = jnp.sum(h * h, axis=0, keepdims=True)
        st_ref[2:8, :] = jnp.zeros((6, HID), jnp.float32)
    return kernel


def _phase3_kernel(h2_ref, ss_ref, w3_ref, out_ref):
    a = h2_ref[...].astype(jnp.float32)
    a = jnp.maximum(a * ss_ref[0:1, :] + ss_ref[1:2, :], 0.0)
    out_ref[...] = jnp.dot(a.astype(BF16), w3_ref[...],
                           preferred_element_type=jnp.float32)


def _bn_scale_shift(partial, n, gamma, beta):
    """Combine per-tile (sum, sumsq) partials into BN (scale; shift), f32."""
    p = partial.reshape(-1, 8, HID)
    s = jnp.sum(p[:, 0, :], axis=0)
    sq = jnp.sum(p[:, 1, :], axis=0)
    mean = s / n
    var = jnp.maximum(sq / n - mean * mean, 0.0)
    scale = gamma * lax.rsqrt(var + BN_EPS)
    shift = beta - mean * scale
    return jnp.stack([scale, shift], axis=0)  # (2, HID) f32


# ---------------------------------------------------------------------------
# Wrapper
# ---------------------------------------------------------------------------
def netT_forward(z, w1_t, bn_params, w2_t, w3_t, *,
                 block_rows=512, force_tiled=False):
    """z: (N, xn).  w*_t: (in, out) transposed Linear weights.
    bn_params: (4, 128) = [gamma1; beta1; gamma2; beta2] (f32).
    block_rows: row tile for the large-N path (>=256 recommended on v6e/v7x,
    128-256 is enough on v5e's 128x128 MXU)."""
    n, xn = z.shape
    yn = w3_t.shape[1]
    yn_pad = _roundup(yn, 128)

    # bf16 matmul operands, cast once here (weights are constant across calls;
    # producers that already hold bf16 pass through unchanged).
    z_bf = z.astype(BF16)
    w1 = w1_t.astype(BF16)
    w2 = w2_t.astype(BF16)
    w3 = w3_t.astype(BF16)
    if yn_pad != yn:  # lane-dense output: pad with zero columns -> unmasked vst
        w3 = jnp.zeros((HID, yn_pad), BF16).at[:, :yn].set(w3)
    bn = bn_params.astype(jnp.float32)

    # ---- VMEM accounting for the single-block path (lane-padding aware). ----
    xn_l = _roundup(xn, 128)          # (N, xn) occupies full 128-lane vregs
    n_s = _roundup(max(n, 8), 8)
    per_row = (2 * xn_l               # z (bf16)
               + 2 * 4 * HID          # two live f32 (N,128) intermediates
               + 2 * HID              # bf16 copy feeding the next matmul
               + 4 * yn_pad)          # f32 output block
    weight_bytes = 2 * (xn * HID + HID * HID + HID * yn_pad) + 4 * bn.size
    single_bytes = n_s * per_row + weight_bytes

    cap = _vmem_capacity_bytes()
    budget = int(cap * 0.8)           # ~100 MiB on v5e/v6e, ~51 MiB on v7x

    if not force_tiled and single_bytes + (2 << 20) <= budget:
        vmem_limit = int(min(budget, max(2 * single_bytes + (4 << 20), 16 << 20)))
        vmem = pl.BlockSpec(memory_space=pltpu.MemorySpace.VMEM)
        flops = 2 * n * (xn * HID + HID * HID + HID * yn_pad) + 12 * n * HID
        bytes_accessed = (2 * (z_bf.size + w1.size + w2.size + w3.size)
                          + 4 * (bn.size + n * yn_pad))
        out = pl.pallas_call(
            _netT_single_kernel,
            out_shape=jax.ShapeDtypeStruct((n, yn_pad), jnp.float32),
            in_specs=[vmem] * 5,
            out_specs=vmem,
            compiler_params=pltpu.CompilerParams(vmem_limit_bytes=vmem_limit),
            cost_estimate=pl.CostEstimate(flops=flops, transcendentals=2 * HID,
                                          bytes_accessed=bytes_accessed),
        )(z_bf, w1, bn, w2, w3)
        return out[:, :yn]

    # ---- Row-tiled three-phase path. ----------------------------------------
    tm = max(16, min(_roundup(block_rows, 16), _roundup(n, 16)))
    n_pad = _roundup(n, tm)
    nt = n_pad // tm
    if n_pad != n:
        z_bf = jnp.pad(z_bf, ((0, n_pad - n), (0, 0)))

    par = pltpu.CompilerParams(dimension_semantics=("parallel",))
    row_spec = lambda width: pl.BlockSpec((tm, width), lambda i: (i, 0))
    full_spec = lambda shape: pl.BlockSpec(shape, lambda i: (0, 0))
    st_shape = jax.ShapeDtypeStruct((8 * nt, HID), jnp.float32)
    st_spec = pl.BlockSpec((8, HID), lambda i: (i, 0))

    # Phase A: lin1 + bn1 partial stats.
    h1, st1 = pl.pallas_call(
        _phase1_kernel,
        grid=(nt,),
        in_specs=[row_spec(xn), full_spec((xn, HID))],
        out_shape=(jax.ShapeDtypeStruct((n_pad, HID), BF16), st_shape),
        out_specs=(row_spec(HID), st_spec),
        compiler_params=par,
        cost_estimate=pl.CostEstimate(
            flops=2 * n_pad * xn * HID + 2 * n_pad * HID, transcendentals=0,
            bytes_accessed=2 * (z_bf.size + w1.size + n_pad * HID)
                           + 4 * 8 * nt * HID),
    )(z_bf, w1)
    ss1 = _bn_scale_shift(st1, n, bn[0], bn[1])

    # Phase B: bn1 normalize + ReLU + lin2 + bn2 partial stats.
    h2, st2 = pl.pallas_call(
        _make_phase2_kernel(tm, n, n_pad != n),
        grid=(nt,),
        in_specs=[row_spec(HID), full_spec((2, HID)), full_spec((HID, HID))],
        out_shape=(jax.ShapeDtypeStruct((n_pad, HID), BF16), st_shape),
        out_specs=(row_spec(HID), st_spec),
        compiler_params=par,
        cost_estimate=pl.CostEstimate(
            flops=2 * n_pad * HID * HID + 6 * n_pad * HID, transcendentals=0,
            bytes_accessed=2 * (2 * n_pad * HID + w2.size)
                           + 4 * (2 * HID + 8 * nt * HID)),
    )(h1, ss1, w2)
    ss2 = _bn_scale_shift(st2, n, bn[2], bn[3])

    # Phase C: bn2 normalize + ReLU + lin_out (lane-dense padded store).
    out = pl.pallas_call(
        _phase3_kernel,
        grid=(nt,),
        in_specs=[row_spec(HID), full_spec((2, HID)), full_spec((HID, yn_pad))],
        out_shape=jax.ShapeDtypeStruct((n_pad, yn_pad), jnp.float32),
        out_specs=row_spec(yn_pad),
        compiler_params=par,
        cost_estimate=pl.CostEstimate(
            flops=2 * n_pad * HID * yn_pad + 4 * n_pad * HID, transcendentals=0,
            bytes_accessed=2 * (n_pad * HID + w3.size)
                           + 4 * (2 * HID + n_pad * yn_pad)),
    )(h2, ss2, w3)

    return out[:n, :yn]


# ---------------------------------------------------------------------------
# Parameters / reference / test
# ---------------------------------------------------------------------------
def make_params(xn, yn, key):
    """Deterministic synthetic parameters (PyTorch-Linear-like init scale)."""
    k1, k2, k3 = jax.random.split(key, 3)
    # nn.Linear weight is (out, in); we store the transpose (in, out).
    w1_t = jax.random.uniform(k1, (xn, HID), jnp.float32,
                              minval=-1.0, maxval=1.0) / jnp.sqrt(xn)
    w2_t = jax.random.uniform(k2, (HID, HID), jnp.float32,
                              minval=-1.0, maxval=1.0) / jnp.sqrt(HID)
    w3_t = jax.random.uniform(k3, (HID, yn), jnp.float32,
                              minval=-1.0, maxval=1.0) / jnp.sqrt(HID)
    bn_params = jnp.concatenate([
        jnp.ones((1, HID), jnp.float32),   # gamma1
        jnp.zeros((1, HID), jnp.float32),  # beta1
        jnp.ones((1, HID), jnp.float32),   # gamma2
        jnp.zeros((1, HID), jnp.float32),  # beta2
    ], axis=0)
    return w1_t, bn_params, w2_t, w3_t


def reference_forward(z, w1_t, bn_params, w2_t, w3_t):
    """Pure-JAX f32 reference mirroring PyTorch training-mode forward."""
    def bn(x, g, b):
        m = jnp.mean(x, axis=0, keepdims=True)
        v = jnp.mean((x - m) ** 2, axis=0, keepdims=True)
        return (x - m) / jnp.sqrt(v + BN_EPS) * g + b
    g1, b1 = bn_params[0:1, :], bn_params[1:2, :]
    g2, b2 = bn_params[2:3, :], bn_params[3:4, :]
    h = jnp.maximum(bn(z @ w1_t, g1, b1), 0.0)
    h = jnp.maximum(bn(h @ w2_t, g2, b2), 0.0)
    return h @ w3_t


if __name__ == "__main__":
    # Small shapes consistent with the module: batch=8, xn=16, yn=8.
    N, XN, YN = 8, 16, 8
    key = jax.random.PRNGKey(0)
    kz, kp = jax.random.split(key)

    z = jax.random.normal(kz, (N, XN), jnp.float32)
    params = make_params(XN, YN, kp)

    # Small-batch path: fully fused single-block kernel.
    out = jax.block_until_ready(netT_forward(z, *params))
    ref = reference_forward(z, *params)
    assert out.shape == (N, YN)
    # bf16 matmul operands (f32 accumulation) vs f32 reference -> looser tol.
    assert jnp.allclose(out, ref, atol=5e-2, rtol=5e-2), "single-block mismatch"

    # Exercise the row-tiled three-phase path (including ragged-batch masking:
    # 200 rows with a 64-row tile -> padded to 256).
    N2 = 200
    z2 = jax.random.normal(jax.random.PRNGKey(1), (N2, XN), jnp.float32)
    out2 = jax.block_until_ready(
        netT_forward(z2, *params, block_rows=64, force_tiled=True))
    ref2 = reference_forward(z2, *params)
    assert out2.shape == (N2, YN)
    # bf16 operands + bf16 HBM intermediates between phases -> looser tol.
    assert jnp.allclose(out2, ref2, atol=1e-1, rtol=1e-1), "tiled mismatch"

    print("KERNEL_OK")
</pallas_src>

<mosaic_0001>
module attributes {stable_mosaic.version = 11 : i64} {
  func.func @_netT_single_kernel(%arg0: memref<8x16xbf16, #tpu.memory_space<vmem>>, %arg1: memref<16x128xbf16, #tpu.memory_space<vmem>>, %arg2: memref<4x128xf32, #tpu.memory_space<vmem>>, %arg3: memref<128x128xbf16, #tpu.memory_space<vmem>>, %arg4: memref<128x128xbf16, #tpu.memory_space<vmem>>, %arg5: memref<8x128xf32, #tpu.memory_space<vmem>>) attributes {dimension_semantics = [], scalar_prefetch = 0 : i64, scratch_operands = 0 : i64, tpu.core_type = #tpu.core_type<tc>} {
    %c0 = arith.constant 0 : index
    %c0_0 = arith.constant 0 : index
    %0 = vector.load %arg0[%c0, %c0_0] : memref<8x16xbf16, #tpu.memory_space<vmem>>, vector<8x16xbf16>
    %c0_1 = arith.constant 0 : index
    %c0_2 = arith.constant 0 : index
    %1 = vector.load %arg1[%c0_1, %c0_2] : memref<16x128xbf16, #tpu.memory_space<vmem>>, vector<16x128xbf16>
    %cst = arith.constant dense<0.000000e+00> : vector<8x128xf32>
    %2 = tpu.matmul %0, %1, %cst {dimension_numbers = #tpu.dot_dimension_numbers<[1], [0], [0], [1], [0, 0, 1, 1], [], []>} : vector<8x16xbf16>, vector<16x128xbf16>, vector<8x128xf32> -> vector<8x128xf32>
    %c0_3 = arith.constant 0 : index
    %c0_4 = arith.constant 0 : index
    %3 = vector.load %arg2[%c0_3, %c0_4] : memref<4x128xf32, #tpu.memory_space<vmem>>, vector<1x128xf32>
    %c1 = arith.constant 1 : index
    %c0_5 = arith.constant 0 : index
    %4 = vector.load %arg2[%c1, %c0_5] : memref<4x128xf32, #tpu.memory_space<vmem>>, vector<1x128xf32>
    %cst_6 = arith.constant dense<0.000000e+00> : vector<128xf32>
    %5 = vector.multi_reduction <add>, %2, %cst_6 [0] : vector<8x128xf32> to vector<128xf32>
    %6 = vector.shape_cast %5 : vector<128xf32> to vector<1x128xf32>
    %cst_7 = arith.constant 8.000000e+00 : f32
    %7 = vector.broadcast %cst_7 : f32 to vector<1x128xf32>
    %8 = arith.divf %6, %7 : vector<1x128xf32>
    %9 = arith.mulf %2, %2 : vector<8x128xf32>
    %cst_8 = arith.constant dense<0.000000e+00> : vector<128xf32>
    %10 = vector.multi_reduction <add>, %9, %cst_8 [0] : vector<8x128xf32> to vector<128xf32>
    %11 = vector.shape_cast %10 : vector<128xf32> to vector<1x128xf32>
    %cst_9 = arith.constant 8.000000e+00 : f32
    %12 = vector.broadcast %cst_9 : f32 to vector<1x128xf32>
    %13 = arith.divf %11, %12 : vector<1x128xf32>
    %14 = arith.mulf %8, %8 : vector<1x128xf32>
    %15 = arith.subf %13, %14 : vector<1x128xf32>
    %cst_10 = arith.constant 0.000000e+00 : f32
    %16 = vector.broadcast %cst_10 : f32 to vector<1x128xf32>
    %17 = arith.maximumf %15, %16 : vector<1x128xf32>
    %cst_11 = arith.constant 9.99999974E-6 : f32
    %18 = vector.broadcast %cst_11 : f32 to vector<1x128xf32>
    %19 = arith.addf %17, %18 : vector<1x128xf32>
    %20 = math.rsqrt %19 : vector<1x128xf32>
    %21 = arith.mulf %20, %3 : vector<1x128xf32>
    %22 = arith.mulf %8, %21 : vector<1x128xf32>
    %23 = arith.subf %4, %22 : vector<1x128xf32>
    %24 = vector.broadcast %21 : vector<1x128xf32> to vector<8x128xf32>
    %25 = arith.mulf %2, %24 : vector<8x128xf32>
    %26 = vector.broadcast %23 : vector<1x128xf32> to vector<8x128xf32>
    %27 = arith.addf %25, %26 : vector<8x128xf32>
    %cst_12 = arith.constant 0.000000e+00 : f32
    %28 = vector.broadcast %cst_12 : f32 to vector<8x128xf32>
    %29 = arith.maximumf %27, %28 : vector<8x128xf32>
    %30 = arith.truncf %29 : vector<8x128xf32> to vector<8x128xbf16>
    %c0_13 = arith.constant 0 : index
    %c0_14 = arith.constant 0 : index
    %31 = vector.load %arg3[%c0_13, %c0_14] : memref<128x128xbf16, #tpu.memory_space<vmem>>, vector<128x128xbf16>
    %cst_15 = arith.constant dense<0.000000e+00> : vector<8x128xf32>
    %32 = tpu.matmul %30, %31, %cst_15 {dimension_numbers = #tpu.dot_dimension_numbers<[1], [0], [0], [1], [0, 0, 1, 1], [], []>} : vector<8x128xbf16>, vector<128x128xbf16>, vector<8x128xf32> -> vector<8x128xf32>
    %c2 = arith.constant 2 : index
    %c0_16 = arith.constant 0 : index
    %33 = vector.load %arg2[%c2, %c0_16] : memref<4x128xf32, #tpu.memory_space<vmem>>, vector<1x128xf32>
    %c3 = arith.constant 3 : index
    %c0_17 = arith.constant 0 : index
    %34 = vector.load %arg2[%c3, %c0_17] : memref<4x128xf32, #tpu.memory_space<vmem>>, vector<1x128xf32>
    %cst_18 = arith.constant dense<0.000000e+00> : vector<128xf32>
    %35 = vector.multi_reduction <add>, %32, %cst_18 [0] : vector<8x128xf32> to vector<128xf32>
    %36 = vector.shape_cast %35 : vector<128xf32> to vector<1x128xf32>
    %cst_19 = arith.constant 8.000000e+00 : f32
    %37 = vector.broadcast %cst_19 : f32 to vector<1x128xf32>
    %38 = arith.divf %36, %37 : vector<1x128xf32>
    %39 = arith.mulf %32, %32 : vector<8x128xf32>
    %cst_20 = arith.constant dense<0.000000e+00> : vector<128xf32>
    %40 = vector.multi_reduction <add>, %39, %cst_20 [0] : vector<8x128xf32> to vector<128xf32>
    %41 = vector.shape_cast %40 : vector<128xf32> to vector<1x128xf32>
    %cst_21 = arith.constant 8.000000e+00 : f32
    %42 = vector.broadcast %cst_21 : f32 to vector<1x128xf32>
    %43 = arith.divf %41, %42 : vector<1x128xf32>
    %44 = arith.mulf %38, %38 : vector<1x128xf32>
    %45 = arith.subf %43, %44 : vector<1x128xf32>
    %cst_22 = arith.constant 0.000000e+00 : f32
    %46 = vector.broadcast %cst_22 : f32 to vector<1x128xf32>
    %47 = arith.maximumf %45, %46 : vector<1x128xf32>
    %cst_23 = arith.constant 9.99999974E-6 : f32
    %48 = vector.broadcast %cst_23 : f32 to vector<1x128xf32>
    %49 = arith.addf %47, %48 : vector<1x128xf32>
    %50 = math.rsqrt %49 : vector<1x128xf32>
    %51 = arith.mulf %50, %33 : vector<1x128xf32>
    %52 = arith.mulf %38, %51 : vector<1x128xf32>
    %53 = arith.subf %34, %52 : vector<1x128xf32>
    %54 = vector.broadcast %51 : vector<1x128xf32> to vector<8x128xf32>
    %55 = arith.mulf %32, %54 : vector<8x128xf32>
    %56 = vector.broadcast %53 : vector<1x128xf32> to vector<8x128xf32>
    %57 = arith.addf %55, %56 : vector<8x128xf32>
    %cst_24 = arith.constant 0.000000e+00 : f32
    %58 = vector.broadcast %cst_24 : f32 to vector<8x128xf32>
    %59 = arith.maximumf %57, %58 : vector<8x128xf32>
    %60 = arith.truncf %59 : vector<8x128xf32> to vector<8x128xbf16>
    %c0_25 = arith.constant 0 : index
    %c0_26 = arith.constant 0 : index
    %61 = vector.load %arg4[%c0_25, %c0_26] : memref<128x128xbf16, #tpu.memory_space<vmem>>, vector<128x128xbf16>
    %cst_27 = arith.constant dense<0.000000e+00> : vector<8x128xf32>
    %62 = tpu.matmul %60, %61, %cst_27 {dimension_numbers = #tpu.dot_dimension_numbers<[1], [0], [0], [1], [0, 0, 1, 1], [], []>} : vector<8x128xbf16>, vector<128x128xbf16>, vector<8x128xf32> -> vector<8x128xf32>
    %c0_28 = arith.constant 0 : index
    %c0_29 = arith.constant 0 : index
    %63 = vector.load %arg5[%c0_28, %c0_29] : memref<8x128xf32, #tpu.memory_space<vmem>>, vector<8x128xf32>
    tpu.vector_store %arg5[%c0_28, %c0_29], %62 {strides = array<i32>} : memref<8x128xf32, #tpu.memory_space<vmem>>, vector<8x128xf32>,
    return
  }
}

</mosaic_0001>

<bundles_post_ra>
// kernel: tpu_custom_call.1
= control target key start
LH: loop header
LB: loop body
LE: loop exit
PB: predicated region body
PF: predicated region fallthrough
CT: control target
= control target key end

     0   :  { %10 = vsyncpa [#allocation3], 0  ;;  %s699_s0 = inlined_call_operand.hbm [shape: bf16[8,16], index: 0, kind: input, shape index: {}]   ;;  %s700_s1 = inlined_call_operand.hbm [shape: bf16[16,128], index: 1, kind: input, shape index: {}]   ;;  %s701_s2 = inlined_call_operand.hbm [shape: f32[4,128], index: 2, kind: input, shape index: {}]   ;;  %s702_s3 = inlined_call_operand.hbm [shape: bf16[128,128], index: 3, kind: input, shape index: {}]   ;;  %s703_s4 = inlined_call_operand.hbm [shape: bf16[128,128], index: 4, kind: input, shape index: {}]   ;;  %s704_s5 = inlined_call_operand.hbm [shape: f32[8,128], index: 5, kind: output, shape index: {}]  }
   0x1   :  { %11 = vsyncpa [#allocation6], 0 }
   0x2   :  { %12 = vsyncpa [#allocation9], 0  ;;  %s29_s20 = sshll.u32 %s700_s1, 4  ;;  %s30_s20 = int_to_ptr.hbm [resolvable:$true] %s29_s20 }
   0x3   :  { %13 = vsyncpa [#allocation4], 0  ;;  %s636_s21 = smov [#allocation5]   ;;  %s53_s25 = sshll.u32 %s702_s3, 4  ;;  %s54_s25 = int_to_ptr.hbm [resolvable:$true] %s53_s25 }
   0x4   :  { %s31_s22 = sshll.u32 %s636_s21, 4  ;;  %s637_s26 = smov 64   ;;  %s32_s22 = int_to_ptr.vmem [resolvable:$true] %s31_s22 }
   0x5   :  { %s638_s27 = smov 4   ;;  %s639_s28 = smov [#allocation8]  }
   0x6   :  { %37 = dma.hbm_to_vmem [thread:$0]  %s30_s20, 128, %s32_s22, [#allocation6], %s637_s26, %s637_s26, %s638_s27  }
   0x7   :  { %s55_s29 = sshll.u32 %s639_s28, 4  ;;  %s19_s7 = sshll.u32 %s699_s0, 4  ;;  %s56_s29 = int_to_ptr.vmem [resolvable:$true] %s55_s29  ;;  %s20_s7 = int_to_ptr.hbm [resolvable:$true] %s19_s7 }
   0x8   :  { %61 = dma.hbm_to_vmem [thread:$0]  %s54_s25, 1024, %s56_s29, [#allocation9], %s637_s26, %s637_s26, %s638_s27  }
   0x9   :  { %s43_s9 = sshll.u32 %s701_s2, 4  ;;  %s640_s10 = smov [#allocation2]   ;;  %s44_s9 = int_to_ptr.hbm [resolvable:$true] %s43_s9 }
   0xa   :  { %s21_s11 = sshll.u32 %s640_s10, 4  ;;  %s641_s3 = smov [#allocation7]   ;;  %s22_s11 = int_to_ptr.vmem [resolvable:$true] %s21_s11 }
   0xb   :  { %24 = dma.hbm_to_vmem [thread:$0]  %s20_s7, 64, %s22_s11, [#allocation3]  }
   0xc   :  { %s45_s12 = sshll.u32 %s641_s3, 4  ;;  %s66_s15 = sshll.u32 %s703_s4, 4  ;;  %s46_s12 = int_to_ptr.vmem [resolvable:$true] %s45_s12  ;;  %s67_s15 = int_to_ptr.hbm [resolvable:$true] %s66_s15 }
   0xd   :  { %48 = dma.hbm_to_vmem [thread:$0]  %s44_s9, 64, %s46_s12, [#allocation6]  }
   0xe   :  { %s642_s0 = smov [#allocation10]  }
   0xf   :  { %s68_s16 = sshll.u32 %s642_s0, 4  ;;  %s69_s16 = int_to_ptr.vmem [resolvable:$true] %s68_s16 }
  0x10   :  { %74 = dma.hbm_to_vmem [thread:$0]  %s67_s15, 1024, %s69_s16, [#allocation9], %s637_s26, %s637_s26, %s638_s27  }
  0x11   :  { %628 = dma.done.wait [#allocation3], 64  }
  0x12   :  { %629 = vsyncadd [#allocation3], 4294967232 }
  0x13   :  { %630 = dma.done.wait [#allocation6], 192  }
  0x14   :  { %631 = vsyncadd [#allocation6], 4294967104 }
  0x15   :  { %632 = dma.done.wait [#allocation9], 2048  }
  0x16   :  { %633 = vsyncadd [#allocation9], 4294965248  ;;  %v452_v0 = vld [vmem:[#allocation5] sm:$0xff]  ;;  %v96_v1 = vld [vmem:[#allocation2] sm:$0xf]  ;;  %vm105_vm0 = vcmask 130048  }
  0x17   :  { %116 = vmatpush.bf16.msra.mxu0 %v452_v0  ;;  %v460_v2 = vld [vmem:[#allocation8 + $0x38] sm:$0xff]  ;;  %v459_v3 = vld [vmem:[#allocation8 + $0x30] sm:$0xff]  ;;  %v643_v4 = vmov 8.0   ;;  %v458_v5 = vld [vmem:[#allocation8 + $0x28] sm:$0xff]  ;;  %s644_s2 = smov [#allocation11]   ;;  %s371_s19 = sshll.u32 %s704_s5, 4  ;;  %s372_s19 = int_to_ptr.hbm [resolvable:$true] %s371_s19 }
  0x18   :  { %233 = vmatpush.bf16.msra.mxu1 %v460_v2  ;;  %478 = vrcp.f32 %v643_v4  ;;  %v457_v7 = vld [vmem:[#allocation8 + $0x20] sm:$0xff]  ;;  %v456_v9 = vld [vmem:[#allocation8 + $0x18] sm:$0xff]  ;;  %v455_v11 = vld [vmem:[#allocation8 + $0x10] sm:$0xff]  ;;  %s369_s4 = sshll.u32 %s644_s2, 4  ;;  %s370_s4 = int_to_ptr.vmem [resolvable:$true] %s369_s4 }
  0x19   :  { %v454_v18 = vld [vmem:[#allocation8 + $0x8] sm:$0xff]  ;;  %v453_v24 = vld [vmem:[#allocation8] sm:$0xff]  ;;  %v122_v43 = vld [vmem:[#allocation7] sm:$0x1] }
  0x1a   :  { %387 = vmatmul.msk.bf16.vlgmr.msra.gmra.mxu0 %vm105_vm0, %v96_v1  ;;  %v123_v47 = vld [vmem:[#allocation7 + $0x1] sm:$0x1]  ;;  %v467_v57 = vld [vmem:[#allocation10 + $0x30] sm:$0xff]  ;;  %v466_v58 = vld [vmem:[#allocation10 + $0x28] sm:$0xff] }
  0x1b   :  { %v468_v56 = vld [vmem:[#allocation10 + $0x38] sm:$0xff]  ;;  %v465_v59 = vld [vmem:[#allocation10 + $0x20] sm:$0xff]  ;;  %v463_v0 = vld [vmem:[#allocation10 + $0x10] sm:$0xff] }
  0x1c   :  { %234 = vmatpush.bf16.msra.mxu1 %v459_v3  ;;  %350 = vmatpush.bf16.msra.mxu2 %v468_v56  ;;  %v464_v60 = vld [vmem:[#allocation10 + $0x18] sm:$0xff] }
  0x1e   :  { %v479_v6 = vpop.eup %478 }
  0x1f   :  { %v131_v8 = vmul.f32 8.0, %v479_v6  ;;  %vm135_vm1 = vweird.f32 %v479_v6 }
  0x20   :  { %235 = vmatpush.bf16.msra.mxu1 %v458_v5  ;;  %351 = vmatpush.bf16.msra.mxu2 %v467_v57  ;;  %v462_v5 = vld [vmem:[#allocation10 + $0x8] sm:$0xff] }
  0x21   :  { %v132_v10 = vsub.f32 1.0, %v131_v8 }
  0x23   :  { %v133_v15 = vmul.f32 %v479_v6, %v132_v10 }
  0x24   :  { %236 = vmatpush.bf16.msra.mxu1 %v457_v7  ;;  %352 = vmatpush.bf16.msra.mxu2 %v466_v58 }
  0x25   :  { %v134_v21 = vadd.f32 %v479_v6, %v133_v15 }
  0x27   :  { %v690_v28 = vsel %vm135_vm1, %v479_v6, %v134_v21 }
  0x28   :  { %237 = vmatpush.bf16.msra.mxu1 %v456_v9  ;;  %353 = vmatpush.bf16.msra.mxu2 %v465_v59 }
  0x2c   :  { %238 = vmatpush.bf16.msra.mxu1 %v455_v11  ;;  %354 = vmatpush.bf16.msra.mxu2 %v464_v60  ;;  %v461_v11 = vld [vmem:[#allocation10] sm:$0xff] }
  0x30   :  { %239 = vmatpush.bf16.msra.mxu1 %v454_v18  ;;  %355 = vmatpush.bf16.msra.mxu2 %v463_v0 }
  0x34   :  { %240 = vmatpush.bf16.msra.mxu1 %v453_v24  ;;  %356 = vmatpush.bf16.msra.mxu2 %v462_v5 }
  0x38   :  { %357 = vmatpush.bf16.msra.mxu2 %v461_v11 }
  0x97   :  { %v118_v12 = vpop.f32.mrf.mxu0 }
  0x98   :  { %v124_v13 = vrot.slane %v118_v12, 4  ;;  %v138_v14 = vmul.f32 %v118_v12, %v118_v12 }
  0x9a   :  { %v125_v16 = vadd.f32 %v124_v13, %v118_v12  ;;  %v139_v17 = vrot.slane %v138_v14, 4 }
  0x9c   :  { %v126_v19 = vrot.slane %v125_v16, 2  ;;  %v140_v20 = vadd.f32 %v139_v17, %v138_v14 }
  0x9e   :  { %v127_v22 = vadd.f32 %v126_v19, %v125_v16  ;;  %v141_v23 = vrot.slane %v140_v20, 2 }
  0x9f   :  { %v120_v25 = vpop.f32.mrf.mxu0 }
  0xa0   :  { %v128_v26 = vrot.slane %v127_v22, 1  ;;  %v142_v27 = vadd.f32 %v141_v23, %v140_v20 }
  0xa2   :  { %v129_v29 = vadd.f32 %v128_v26, %v127_v22  ;;  %v143_v30 = vrot.slane %v142_v27, 1  ;;  %v246_v26 = vld [vmem:[#allocation7 + $0x2] sm:$0x1] }
  0xa4   :  { %v144_v31 = vadd.f32 %v143_v30, %v142_v27  ;;  %v137_v32 = vmul.f32 %v690_v28, %v129_v29 }
  0xa6   :  { %v145_v33 = vmul.f32 %v144_v31, %v690_v28  ;;  %v146_v34 = vmul.f32 %v137_v32, %v137_v32  ;;  %v247_v31 = vld [vmem:[#allocation7 + $0x3] sm:$0x1] }
  0xa8   :  { %v147_v35 = vsub.f32 %v145_v33, %v146_v34 }
  0xaa   :  { %v148_v36 = vmax.f32 %v147_v35, 0.0 }
  0xac   :  { %v149_v37 = vadd.f32 1e-05, %v148_v36 }
  0xae   :  { %480 = vrsqrt.f32 %v149_v37  ;;  %vm156_vm3 = vweird.f32 %v149_v37 }
  0xb4   :  { %v481_v38 = vpop.eup %480 }
  0xb5   :  { %v151_v39 = vmul.f32 %v481_v38, %v149_v37  ;;  %vm157_vm2 = vweird.f32 %v481_v38 }
  0xb6   :  { %vm158_vm4 = vmor %vm156_vm3, %vm157_vm2 }
  0xb7   :  { %v152_v40 = vmul.f32 %v481_v38, %v151_v39 }
  0xb9   :  { %v153_v41 = vmul.f32 0.5, %v152_v40 }
  0xbb   :  { %v154_v42 = vsub.f32 1.5, %v153_v41 }
  0xbd   :  { %v155_v44 = vmul.f32 %v481_v38, %v154_v42 }
  0xbf   :  { %v159_v45 = vsel %vm158_vm4, %v481_v38, %v155_v44 }
  0xc0   :  { %v160_v46 = vmul.f32 %v159_v45, %v122_v43 }
  0xc2   :  { %v161_v48 = vmul.f32 %v160_v46, %v137_v32  ;;  %v163_v49 = vperm.slane %v160_v46, 0 }
  0xc4   :  { %v162_v50 = vsub.f32 %v123_v47, %v161_v48  ;;  %v164_v51 = vmul.f32 %v163_v49, %v118_v12 }
  0xc6   :  { %v165_v52 = vperm.slane %v162_v50, 0 }
  0xc8   :  { %v166_v53 = vadd.f32 %v165_v52, %v164_v51 }
  0xca   :  { %v167_v54 = vmax.f32 %v166_v53, 0.0 }
  0xcc   :  { %v168_v55 = vpack.c.bf16 %v167_v54, %v167_v54 }
  0xce   :  { %241 = vmatmul.bf16.vlgmr.msra.gmra.mxu1 %v168_v55 }
 0x14b   :  { %v242_v61 = vpop.f32.mrf.mxu1 }
 0x14c   :  { %v248_v62 = vrot.slane %v242_v61, 4  ;;  %v255_v63 = vmul.f32 %v242_v61, %v242_v61 }
 0x14e   :  { %v249_v1 = vadd.f32 %v248_v62, %v242_v61  ;;  %v256_v2 = vrot.slane %v255_v63, 4 }
 0x150   :  { %v250_v3 = vrot.slane %v249_v1, 2  ;;  %v257_v4 = vadd.f32 %v256_v2, %v255_v63 }
 0x152   :  { %v251_v6 = vadd.f32 %v250_v3, %v249_v1  ;;  %v258_v7 = vrot.slane %v257_v4, 2 }
 0x153   :  { %v244_v8 = vpop.f32.mrf.mxu1 }
 0x154   :  { %v252_v9 = vrot.slane %v251_v6, 1  ;;  %v259_v10 = vadd.f32 %v258_v7, %v257_v4 }
 0x156   :  { %v253_v12 = vadd.f32 %v252_v9, %v251_v6  ;;  %v260_v13 = vrot.slane %v259_v10, 1 }
 0x158   :  { %v261_v14 = vadd.f32 %v260_v13, %v259_v10  ;;  %v254_v15 = vmul.f32 %v253_v12, %v690_v28 }
 0x15a   :  { %v262_v16 = vmul.f32 %v261_v14, %v690_v28  ;;  %v263_v17 = vmul.f32 %v254_v15, %v254_v15 }
 0x15c   :  { %v264_v18 = vsub.f32 %v262_v16, %v263_v17 }
 0x15e   :  { %v265_v19 = vmax.f32 %v264_v18, 0.0 }
 0x160   :  { %v266_v20 = vadd.f32 1e-05, %v265_v19 }
 0x162   :  { %482 = vrsqrt.f32 %v266_v20  ;;  %vm273_vm6 = vweird.f32 %v266_v20 }
 0x168   :  { %v483_v21 = vpop.eup %482 }
 0x169   :  { %v268_v22 = vmul.f32 %v483_v21, %v266_v20  ;;  %vm274_vm5 = vweird.f32 %v483_v21 }
 0x16a   :  { %vm275_vm7 = vmor %vm273_vm6, %vm274_vm5 }
 0x16b   :  { %v269_v23 = vmul.f32 %v483_v21, %v268_v22 }
 0x16d   :  { %v270_v24 = vmul.f32 0.5, %v269_v23 }
 0x16f   :  { %v271_v25 = vsub.f32 1.5, %v270_v24 }
 0x171   :  { %v272_v27 = vmul.f32 %v483_v21, %v271_v25 }
 0x173   :  { %v276_v29 = vsel %vm275_vm7, %v483_v21, %v272_v27 }
 0x174   :  { %v277_v30 = vmul.f32 %v276_v29, %v246_v26 }
 0x176   :  { %v278_v32 = vmul.f32 %v277_v30, %v254_v15  ;;  %v280_v28 = vperm.slane %v277_v30, 0 }
 0x178   :  { %v279_v33 = vsub.f32 %v247_v31, %v278_v32  ;;  %v281_v34 = vmul.f32 %v280_v28, %v242_v61 }
 0x17a   :  { %v282_v35 = vperm.slane %v279_v33, 0 }
 0x17c   :  { %v283_v36 = vadd.f32 %v282_v35, %v281_v34 }
 0x17e   :  { %v284_v37 = vmax.f32 %v283_v36, 0.0 }
 0x180   :  { %v285_v38 = vpack.c.bf16 %v284_v37, %v284_v37 }
 0x182   :  { %358 = vmatmul.bf16.vlgmr.msra.gmra.mxu2 %v285_v38 }
 0x205   :  { %v359_v39 = vpop.f32.mrf.mxu2 }
 0x206   :  { %363 = vst [vmem:[#allocation11] sm:$0xff] %v359_v39 }
 0x207   :  { %374 = dma.vmem_to_hbm [thread:$0]  %s370_s4, 128, %s372_s19, [#allocation4]  }
 0x20d   :  { %v361_v40 = vpop.f32.mrf.mxu2 }
 0x20e   :  { %634 = dma.done.wait [#allocation4], 128  }
 0x20f   :  { %635 = vsyncadd [#allocation4], 4294967168 }
 0x210   :  { %379 = vsyncpa [#allocation3], 1 }
 0x211   :  { %380 = vsyncpa [#allocation6], 1 }
 0x212   :  { %381 = vsyncpa [#allocation9], 1 }
 0x213   :  { %382 = vsyncpa [#allocation4], 1 }

</bundles_post_ra>
